<compile_context>
chip_gen: v5e
topology: v5e:2x2
jax: 0.10.0
libtpu: 0.0.40
codegen_flags: <defaults>
</compile_context>

<pallas_src>
import functools

import jax
import jax.numpy as jnp
from jax.experimental import pallas as pl
from jax.experimental.pallas import tpu as pltpu


def _round_up(v, m):
    return ((v + m - 1) // m) * m


_TM_PREF = 512    # row tile (sublane axis of A)
_TK_PREF = 2048   # reduction tile (lane axis of A)
_H_LANE = 128     # lane-dense hidden padding
# XW kept VMEM-resident only if a single copy fits this budget (double-buffered
# by the pipeline; leaves room for A tiles / root / out under 32 MiB scoped VMEM).
_XW_RESIDENT_BYTES = 4 << 20


def _plan(n):
    """Pick (padded N, row tile, reduction tile)."""
    if n <= _TK_PREF:
        n_pad = _round_up(n, 32)         # int8 packs 32 sublanes/vreg; single tile
        return n_pad, n_pad, n_pad
    n_pad = _round_up(n, _TK_PREF)       # 2048 is a multiple of tm=512
    return n_pad, _TM_PREF, _TK_PREF


def _sage_layer_kernel(a_ref, xw_ref, inv_deg_ref, root_ref, out_ref, acc_ref, *,
                       apply_relu, xw_resident, tk):
    """out = [relu]( inv_deg * (A_counts @ XW) + root ).

    Grid = (row tiles [parallel], K reduction tiles [arbitrary]).
    a_ref: (tm, tk) int8 counts; xw_ref: resident (Np, Hp) or streamed (tk, Hp)
    bf16; acc_ref: (tm, Hp) f32 accumulator.
    """
    k = pl.program_id(1)

    @pl.when(k == 0)
    def _():
        acc_ref[...] = jnp.zeros_like(acc_ref)

    if xw_resident:
        off = pl.multiple_of(k * tk, 32)
        xw = xw_ref[pl.ds(off, tk), :]
    else:
        xw = xw_ref[...]
    # int8 counts -> bf16 in-register (exact for counts <= 256); f32 MXU accum.
    acc_ref[...] += jnp.dot(a_ref[...].astype(jnp.bfloat16), xw,
                            preferred_element_type=jnp.float32)

    @pl.when(k == pl.num_programs(1) - 1)
    def _():
        h = acc_ref[...] * inv_deg_ref[...] + root_ref[...]
        if apply_relu:
            h = jnp.maximum(h, 0.0)
        out_ref[...] = h.astype(out_ref.dtype)


def _sage_layer(a_counts, xw, inv_deg, root, *, tm, tk, apply_relu, out_dtype):
    """a_counts: (Np, Np) int8; xw: (Np, Hp) bf16 (= X @ W_l, lane-padded);
    inv_deg: (Np, 1) f32; root: (Np, Hp) f32 (= X @ W_r + b, lane-padded)."""
    n_pad = a_counts.shape[0]
    h_pad = xw.shape[1]
    grid = (n_pad // tm, n_pad // tk)

    xw_resident = (n_pad * h_pad * 2) <= _XW_RESIDENT_BYTES
    if xw_resident:
        xw_spec = pl.BlockSpec((n_pad, h_pad), lambda i, k: (0, 0))   # one DMA total
    else:
        xw_spec = pl.BlockSpec((tk, h_pad), lambda i, k: (k, 0))      # streamed

    kernel = functools.partial(_sage_layer_kernel, apply_relu=apply_relu,
                               xw_resident=xw_resident, tk=tk)
    cost = pl.CostEstimate(
        flops=2 * n_pad * n_pad * h_pad,
        transcendentals=0,
        bytes_accessed=(n_pad * n_pad                       # int8 A counts
                        + n_pad * h_pad * 2                 # XW (bf16)
                        + n_pad * h_pad * 4                 # root (f32)
                        + n_pad * h_pad * 4))               # out

    return pl.pallas_call(
        kernel,
        out_shape=jax.ShapeDtypeStruct((n_pad, h_pad), out_dtype),
        grid_spec=pltpu.PrefetchScalarGridSpec(
            num_scalar_prefetch=0,
            grid=grid,
            in_specs=[
                pl.BlockSpec((tm, tk), lambda i, k: (i, k)),       # A counts tile
                xw_spec,                                            # XW
                pl.BlockSpec((tm, 1), lambda i, k: (i, 0)),        # 1/deg per row
                pl.BlockSpec((tm, h_pad), lambda i, k: (i, 0)),    # root term
            ],
            out_specs=pl.BlockSpec((tm, h_pad), lambda i, k: (i, 0)),
            scratch_shapes=[pltpu.VMEM((tm, h_pad), jnp.float32)],
        ),
        compiler_params=pltpu.CompilerParams(
            dimension_semantics=("parallel", "arbitrary"),
        ),
        cost_estimate=cost,
    )(a_counts, xw, inv_deg, root)


def graphsage_net_forward(x, edge_index, params):
    """x: (N, F) float32, edge_index: (2, E) int32 with rows (src, dst)."""
    (w1l, w1r, b1, w2l, w2r, b2, wlin, blin) = params
    n, _ = x.shape
    hidden = w1l.shape[1]
    h_pad = _round_up(hidden, _H_LANE)
    n_pad, tm, tk = _plan(n)

    # ---- Adjacency prologue: int8 edge-multiplicity counts scattered directly
    # into the padded (Np, Np) buffer (single N^2 materialization, 1 B/elem).
    # Degrees computed O(E) from the edge list (no N^2 reductions).
    # TODO(synk): edge multiplicity > 127 overflows int8 -- clamp upstream or
    # fall back to bf16 counts for such multigraphs.
    # TODO(synk): for large sparse graphs replace the dense adjacency with a CSR
    # scalar-prefetch gather so cost scales with E instead of N^2.
    src, dst = edge_index[0], edge_index[1]
    a_counts = jnp.zeros((n_pad, n_pad), jnp.int8).at[dst, src].add(jnp.int8(1))
    deg = jnp.zeros((n_pad,), jnp.float32).at[dst].add(1.0)
    inv_deg = jnp.where(deg > 0.0, 1.0 / deg, 0.0).reshape(n_pad, 1)

    x_pad = jnp.pad(x, ((0, n_pad - n), (0, 0)))                  # f32 (Np, F)

    def pad_lane(w):
        return jnp.pad(w, ((0, 0), (0, h_pad - w.shape[1])))

    # ---- SAGEConv 1 ----
    # (A @ X) @ W_l == A @ (X @ W_l): precompute the tiny X@W matmuls in XLA.
    xw1 = (x_pad @ pad_lane(w1l)).astype(jnp.bfloat16)             # (Np, Hp) bf16
    root1 = x_pad @ pad_lane(w1r) + pad_lane(b1)                   # (Np, Hp) f32
    # NOTE: padded rows of root equal the bias -> padded h rows are nonzero.
    # Harmless: padded A columns are zero and the final [:n] slice drops them.
    h1 = _sage_layer(a_counts, xw1, inv_deg, root1, tm=tm, tk=tk,
                     apply_relu=True, out_dtype=jnp.bfloat16)      # (Np, Hp)
    # F.dropout(x, training=self.training): identity in eval mode.
    # TODO(synk): training-mode dropout would use pltpu.prng_random_bits masking.

    # ---- SAGEConv 2 ----
    h1_real = h1[:, :hidden].astype(jnp.float32)                   # padded cols are 0
    xw2 = (h1_real @ pad_lane(w2l)).astype(jnp.bfloat16)
    root2 = h1_real @ pad_lane(w2r) + pad_lane(b2)
    h2 = _sage_layer(a_counts, xw2, inv_deg, root2, tm=tm, tk=tk,
                     apply_relu=False, out_dtype=jnp.float32)

    # ---- Final Linear(hidden -> 1): kept in XLA so the kernel output stays
    # lane-dense instead of a 1-lane masked store. ----
    y = h2[:n, :hidden] @ wlin + blin
    return y


def init_params(key, feature, hidden):
    ks = jax.random.split(key, 8)

    def lin(k, fan_in, fan_out):
        bound = 1.0 / jnp.sqrt(jnp.float32(fan_in))
        return jax.random.uniform(k, (fan_in, fan_out), jnp.float32, -bound, bound)

    w1l = lin(ks[0], feature, hidden)           # SAGEConv1 lin_l (aggregated neighbors)
    w1r = lin(ks[1], feature, hidden)           # SAGEConv1 lin_r (root)
    b1 = jax.random.uniform(ks[2], (1, hidden), jnp.float32, -0.1, 0.1)
    w2l = lin(ks[3], hidden, hidden)            # SAGEConv2 lin_l
    w2r = lin(ks[4], hidden, hidden)            # SAGEConv2 lin_r
    b2 = jax.random.uniform(ks[5], (1, hidden), jnp.float32, -0.1, 0.1)
    wlin = lin(ks[6], hidden, 1)                # nn.Linear(hidden, 1)
    blin = jax.random.uniform(ks[7], (1, 1), jnp.float32, -0.1, 0.1)
    return (w1l, w1r, b1, w2l, w2r, b2, wlin, blin)


if __name__ == "__main__":
    FEATURE, HIDDEN = 8, 32
    N_NODES, N_EDGES = 16, 48

    key = jax.random.PRNGKey(0)
    kx, ke, kp = jax.random.split(key, 3)

    x = jax.random.normal(kx, (N_NODES, FEATURE), jnp.float32)
    edge_index = jax.random.randint(ke, (2, N_EDGES), 0, N_NODES, jnp.int32)
    params = init_params(kp, FEATURE, HIDDEN)

    fwd = jax.jit(graphsage_net_forward)
    y = fwd(x, edge_index, params)
    jax.block_until_ready(y)
    assert y.shape == (N_NODES, 1)
    print("KERNEL_OK")
</pallas_src>

<mosaic_0001>
module attributes {stable_mosaic.version = 11 : i64} {
  func.func @_sage_layer_kernel(%arg0: i32, %arg1: i32, %arg2: memref<32x32xi8, #tpu.memory_space<vmem>>, %arg3: memref<32x128xbf16, #tpu.memory_space<vmem>>, %arg4: memref<32x1xf32, #tpu.memory_space<vmem>>, %arg5: memref<32x128xf32, #tpu.memory_space<vmem>>, %arg6: memref<32x128xbf16, #tpu.memory_space<vmem>>, %arg7: memref<32x128xf32, #tpu.memory_space<vmem>>) attributes {dimension_semantics = [#tpu.dimension_semantics<parallel>, #tpu.dimension_semantics<arbitrary>], iteration_bounds = array<i64: 1, 1>, scalar_prefetch = 0 : i64, scratch_operands = 1 : i64, tpu.core_type = #tpu.core_type<tc>, window_params = [{transform_indices = @transform_0, window_bounds = array<i64: 32, 32>}, {pipeline_mode = #tpu.pipeline_mode<synchronous>, transform_indices = @transform_1, window_bounds = array<i64: 32, 128>}, {transform_indices = @transform_2, window_bounds = array<i64: 32, 1>}, {transform_indices = @transform_3, window_bounds = array<i64: 32, 128>}, {transform_indices = @transform_4, window_bounds = array<i64: 32, 128>}]} {
    %c0_i32 = arith.constant 0 : i32
    %0 = arith.cmpi eq, %arg1, %c0_i32 : i32
    %1 = arith.extui %0 : i1 to i32
    %c0_i32_0 = arith.constant 0 : i32
    %2 = arith.cmpi ne, %1, %c0_i32_0 : i32
    scf.if %2 {
      %cst_9 = arith.constant 0.000000e+00 : f32
      %16 = vector.broadcast %cst_9 : f32 to vector<32x128xf32>
      %c0_10 = arith.constant 0 : index
      %c0_11 = arith.constant 0 : index
      %17 = vector.load %arg7[%c0_10, %c0_11] : memref<32x128xf32, #tpu.memory_space<vmem>>, vector<32x128xf32>
      tpu.vector_store %arg7[%c0_10, %c0_11], %16 {strides = array<i32>} : memref<32x128xf32, #tpu.memory_space<vmem>>, vector<32x128xf32>,
    } else {
    }
    %c32_i32 = arith.constant 32 : i32
    %3 = arith.muli %arg1, %c32_i32 : i32
    %4 = tpu.assume_multiple %3, 32 : i32
    %5 = arith.index_cast %4 : i32 to index
    %c0 = arith.constant 0 : index
    %6 = vector.load %arg3[%5, %c0] : memref<32x128xbf16, #tpu.memory_space<vmem>>, vector<32x128xbf16>
    %c0_1 = arith.constant 0 : index
    %c0_2 = arith.constant 0 : index
    %7 = vector.load %arg7[%c0_1, %c0_2] : memref<32x128xf32, #tpu.memory_space<vmem>>, vector<32x128xf32>
    %c0_3 = arith.constant 0 : index
    %c0_4 = arith.constant 0 : index
    %8 = vector.load %arg2[%c0_3, %c0_4] : memref<32x32xi8, #tpu.memory_space<vmem>>, vector<32x32xi8>
    %9 = arith.sitofp %8 : vector<32x32xi8> to vector<32x32xbf16>
    %cst = arith.constant dense<0.000000e+00> : vector<32x128xf32>
    %10 = tpu.matmul %9, %6, %cst {dimension_numbers = #tpu.dot_dimension_numbers<[1], [0], [0], [1], [0, 0, 1, 1], [], []>} : vector<32x32xbf16>, vector<32x128xbf16>, vector<32x128xf32> -> vector<32x128xf32>
    %11 = arith.addf %7, %10 : vector<32x128xf32>
    %c0_5 = arith.constant 0 : index
    %c0_6 = arith.constant 0 : index
    %12 = vector.load %arg7[%c0_5, %c0_6] : memref<32x128xf32, #tpu.memory_space<vmem>>, vector<32x128xf32>
    tpu.vector_store %arg7[%c0_5, %c0_6], %11 {strides = array<i32>} : memref<32x128xf32, #tpu.memory_space<vmem>>, vector<32x128xf32>,
    %c0_i32_7 = arith.constant 0 : i32
    %13 = arith.cmpi eq, %arg1, %c0_i32_7 : i32
    %14 = arith.extui %13 : i1 to i32
    %c0_i32_8 = arith.constant 0 : i32
    %15 = arith.cmpi ne, %14, %c0_i32_8 : i32
    scf.if %15 {
      %c0_9 = arith.constant 0 : index
      %c0_10 = arith.constant 0 : index
      %16 = vector.load %arg7[%c0_9, %c0_10] : memref<32x128xf32, #tpu.memory_space<vmem>>, vector<32x128xf32>
      %c0_11 = arith.constant 0 : index
      %c0_12 = arith.constant 0 : index
      %17 = vector.load %arg4[%c0_11, %c0_12] : memref<32x1xf32, #tpu.memory_space<vmem>>, vector<32x1xf32>
      %18 = vector.broadcast %17 : vector<32x1xf32> to vector<32x128xf32>
      %19 = arith.mulf %16, %18 : vector<32x128xf32>
      %c0_13 = arith.constant 0 : index
      %c0_14 = arith.constant 0 : index
      %20 = vector.load %arg5[%c0_13, %c0_14] : memref<32x128xf32, #tpu.memory_space<vmem>>, vector<32x128xf32>
      %21 = arith.addf %19, %20 : vector<32x128xf32>
      %cst_15 = arith.constant 0.000000e+00 : f32
      %22 = vector.broadcast %cst_15 : f32 to vector<32x128xf32>
      %23 = arith.maximumf %21, %22 : vector<32x128xf32>
      %24 = arith.truncf %23 : vector<32x128xf32> to vector<32x128xbf16>
      %c0_16 = arith.constant 0 : index
      %c0_17 = arith.constant 0 : index
      %25 = vector.load %arg6[%c0_16, %c0_17] : memref<32x128xbf16, #tpu.memory_space<vmem>>, vector<32x128xbf16>
      tpu.vector_store %arg6[%c0_16, %c0_17], %24 {strides = array<i32>} : memref<32x128xbf16, #tpu.memory_space<vmem>>, vector<32x128xbf16>,
    } else {
    }
    return
  }
  func.func @transform_0(%arg0: i32, %arg1: i32) -> (i32, i32) {
    %c0_i32 = arith.constant 0 : i32
    return %arg0, %arg1 : i32, i32
  }
  func.func @transform_1(%arg0: i32, %arg1: i32) -> (i32, i32) {
    %c0_i32 = arith.constant 0 : i32
    %c0_i32_0 = arith.constant 0 : i32
    %c0_i32_1 = arith.constant 0 : i32
    return %c0_i32, %c0_i32_0 : i32, i32
  }
  func.func @transform_2(%arg0: i32, %arg1: i32) -> (i32, i32) {
    %c0_i32 = arith.constant 0 : i32
    %c0_i32_0 = arith.constant 0 : i32
    return %arg0, %c0_i32 : i32, i32
  }
  func.func @transform_3(%arg0: i32, %arg1: i32) -> (i32, i32) {
    %c0_i32 = arith.constant 0 : i32
    %c0_i32_0 = arith.constant 0 : i32
    return %arg0, %c0_i32 : i32, i32
  }
  func.func @transform_4(%arg0: i32, %arg1: i32) -> (i32, i32) {
    %c0_i32 = arith.constant 0 : i32
    %c0_i32_0 = arith.constant 0 : i32
    return %arg0, %c0_i32 : i32, i32
  }
}

module attributes {stable_mosaic.version = 11 : i64} {
  func.func @_sage_layer_kernel(%arg0: i32, %arg1: i32, %arg2: memref<32x32xi8, #tpu.memory_space<vmem>>, %arg3: memref<32x128xbf16, #tpu.memory_space<vmem>>, %arg4: memref<32x1xf32, #tpu.memory_space<vmem>>, %arg5: memref<32x128xf32, #tpu.memory_space<vmem>>, %arg6: memref<32x128xf32, #tpu.memory_space<vmem>>, %arg7: memref<32x128xf32, #tpu.memory_space<vmem>>) attributes {dimension_semantics = [#tpu.dimension_semantics<parallel>, #tpu.dimension_semantics<arbitrary>], iteration_bounds = array<i64: 1, 1>, scalar_prefetch = 0 : i64, scratch_operands = 1 : i64, tpu.core_type = #tpu.core_type<tc>, window_params = [{transform_indices = @transform_0, window_bounds = array<i64: 32, 32>}, {pipeline_mode = #tpu.pipeline_mode<synchronous>, transform_indices = @transform_1, window_bounds = array<i64: 32, 128>}, {transform_indices = @transform_2, window_bounds = array<i64: 32, 1>}, {transform_indices = @transform_3, window_bounds = array<i64: 32, 128>}, {transform_indices = @transform_4, window_bounds = array<i64: 32, 128>}]} {
    %c0_i32 = arith.constant 0 : i32
    %0 = arith.cmpi eq, %arg1, %c0_i32 : i32
    %1 = arith.extui %0 : i1 to i32
    %c0_i32_0 = arith.constant 0 : i32
    %2 = arith.cmpi ne, %1, %c0_i32_0 : i32
    scf.if %2 {
      %cst_9 = arith.constant 0.000000e+00 : f32
      %16 = vector.broadcast %cst_9 : f32 to vector<32x128xf32>
      %c0_10 = arith.constant 0 : index
      %c0_11 = arith.constant 0 : index
      %17 = vector.load %arg7[%c0_10, %c0_11] : memref<32x128xf32, #tpu.memory_space<vmem>>, vector<32x128xf32>
      tpu.vector_store %arg7[%c0_10, %c0_11], %16 {strides = array<i32>} : memref<32x128xf32, #tpu.memory_space<vmem>>, vector<32x128xf32>,
    } else {
    }
    %c32_i32 = arith.constant 32 : i32
    %3 = arith.muli %arg1, %c32_i32 : i32
    %4 = tpu.assume_multiple %3, 32 : i32
    %5 = arith.index_cast %4 : i32 to index
    %c0 = arith.constant 0 : index
    %6 = vector.load %arg3[%5, %c0] : memref<32x128xbf16, #tpu.memory_space<vmem>>, vector<32x128xbf16>
    %c0_1 = arith.constant 0 : index
    %c0_2 = arith.constant 0 : index
    %7 = vector.load %arg7[%c0_1, %c0_2] : memref<32x128xf32, #tpu.memory_space<vmem>>, vector<32x128xf32>
    %c0_3 = arith.constant 0 : index
    %c0_4 = arith.constant 0 : index
    %8 = vector.load %arg2[%c0_3, %c0_4] : memref<32x32xi8, #tpu.memory_space<vmem>>, vector<32x32xi8>
    %9 = arith.sitofp %8 : vector<32x32xi8> to vector<32x32xbf16>
    %cst = arith.constant dense<0.000000e+00> : vector<32x128xf32>
    %10 = tpu.matmul %9, %6, %cst {dimension_numbers = #tpu.dot_dimension_numbers<[1], [0], [0], [1], [0, 0, 1, 1], [], []>} : vector<32x32xbf16>, vector<32x128xbf16>, vector<32x128xf32> -> vector<32x128xf32>
    %11 = arith.addf %7, %10 : vector<32x128xf32>
    %c0_5 = arith.constant 0 : index
    %c0_6 = arith.constant 0 : index
    %12 = vector.load %arg7[%c0_5, %c0_6] : memref<32x128xf32, #tpu.memory_space<vmem>>, vector<32x128xf32>
    tpu.vector_store %arg7[%c0_5, %c0_6], %11 {strides = array<i32>} : memref<32x128xf32, #tpu.memory_space<vmem>>, vector<32x128xf32>,
    %c0_i32_7 = arith.constant 0 : i32
    %13 = arith.cmpi eq, %arg1, %c0_i32_7 : i32
    %14 = arith.extui %13 : i1 to i32
    %c0_i32_8 = arith.constant 0 : i32
    %15 = arith.cmpi ne, %14, %c0_i32_8 : i32
    scf.if %15 {
      %c0_9 = arith.constant 0 : index
      %c0_10 = arith.constant 0 : index
      %16 = vector.load %arg7[%c0_9, %c0_10] : memref<32x128xf32, #tpu.memory_space<vmem>>, vector<32x128xf32>
      %c0_11 = arith.constant 0 : index
      %c0_12 = arith.constant 0 : index
      %17 = vector.load %arg4[%c0_11, %c0_12] : memref<32x1xf32, #tpu.memory_space<vmem>>, vector<32x1xf32>
      %18 = vector.broadcast %17 : vector<32x1xf32> to vector<32x128xf32>
      %19 = arith.mulf %16, %18 : vector<32x128xf32>
      %c0_13 = arith.constant 0 : index
      %c0_14 = arith.constant 0 : index
      %20 = vector.load %arg5[%c0_13, %c0_14] : memref<32x128xf32, #tpu.memory_space<vmem>>, vector<32x128xf32>
      %21 = arith.addf %19, %20 : vector<32x128xf32>
      %c0_15 = arith.constant 0 : index
      %c0_16 = arith.constant 0 : index
      %22 = vector.load %arg6[%c0_15, %c0_16] : memref<32x128xf32, #tpu.memory_space<vmem>>, vector<32x128xf32>
      tpu.vector_store %arg6[%c0_15, %c0_16], %21 {strides = array<i32>} : memref<32x128xf32, #tpu.memory_space<vmem>>, vector<32x128xf32>,
    } else {
    }
    return
  }
  func.func @transform_0(%arg0: i32, %arg1: i32) -> (i32, i32) {
    %c0_i32 = arith.constant 0 : i32
    return %arg0, %arg1 : i32, i32
  }
  func.func @transform_1(%arg0: i32, %arg1: i32) -> (i32, i32) {
    %c0_i32 = arith.constant 0 : i32
    %c0_i32_0 = arith.constant 0 : i32
    %c0_i32_1 = arith.constant 0 : i32
    return %c0_i32, %c0_i32_0 : i32, i32
  }
  func.func @transform_2(%arg0: i32, %arg1: i32) -> (i32, i32) {
    %c0_i32 = arith.constant 0 : i32
    %c0_i32_0 = arith.constant 0 : i32
    return %arg0, %c0_i32 : i32, i32
  }
  func.func @transform_3(%arg0: i32, %arg1: i32) -> (i32, i32) {
    %c0_i32 = arith.constant 0 : i32
    %c0_i32_0 = arith.constant 0 : i32
    return %arg0, %c0_i32 : i32, i32
  }
  func.func @transform_4(%arg0: i32, %arg1: i32) -> (i32, i32) {
    %c0_i32 = arith.constant 0 : i32
    %c0_i32_0 = arith.constant 0 : i32
    return %arg0, %c0_i32 : i32, i32
  }
}

</mosaic_0001>

<bundles_post_ra>
// kernel: graphsage_net_forward.2
= control target key start
LH: loop header
LB: loop body
LE: loop exit
PB: predicated region body
PF: predicated region fallthrough
CT: control target
= control target key end

     0   :  { %v197_v2 = vmov 0   ;;  %vm65_vm0 = vcmask 261120   ;;  %s262_s1 = inlined_call_operand.vmem [shape: bf16[32,128], index: 1, kind: input, shape index: {}]   ;;  %s263_s0 = inlined_call_operand.vmem [shape: s8[32,32], index: 0, kind: input, shape index: {}]   ;;  %s264_s2 = inlined_call_operand.vmem [shape: f32[32,1], index: 2, kind: input, shape index: {}]   ;;  %s265_s3 = inlined_call_operand.vmem [shape: f32[32,128], index: 3, kind: input, shape index: {}]   ;;  %s266_s4 = inlined_call_operand.vmem [shape: bf16[32,128], index: 4, kind: output, shape index: {}]  }
   0x1   :  { %v171_v0 = vld [vmem:[%s262_s1 + $0x8] sm:$0xff]  ;;  %v184_v1 = vld [vmem:[%s263_s0] sm:$0xff]   ;;  %196 = vset.pattern.permute.xlu1 %v197_v2  ;;  %195 = vset.pattern.permute.xlu0 %v197_v2  ;;  %v108_v7 = vld [vmem:[%s264_s2 + $0x10] sm:$0xff] }
   0x2   :  { %v185_v3 = vunpack.c.0.s8 %v184_v1  ;;  %v186_v4 = vunpack.c.1.s8 %v184_v1  ;;  %v189_v5 = vunpack.c.2.s8 %v184_v1  ;;  %v190_v6 = vunpack.c.3.s8 %v184_v1  ;;  %v106_v8 = vld [vmem:[%s264_s2] sm:$0xff]  ;;  %78 = vmatpush.bf16.msra.mxu0 %v171_v0  ;;  %191 = vmatpush.bf16.msra.mxu1 %v171_v0  ;;  %v109_v16 = vld [vmem:[%s264_s2 + $0x18] sm:$0xff]  ;;  %v107_v17 = vld [vmem:[%s264_s2 + $0x8] sm:$0xff] }
   0x3   :  { %v170_v9 = vld [vmem:[%s262_s1] sm:$0xff]  ;;  %122 = vperm.xlu1 %196, %v108_v7   ;;  %112 = vperm.xlu0 %195, %v106_v8   ;;  %v136_v25 = vld [vmem:[%s265_s3 + $0x10] sm:$0xff]  ;;  %v135_v29 = vld [vmem:[%s265_s3 + $0x8] sm:$0xff] }
   0x4   :  { %v47_v10 = vcvt.s32.f32 %v185_v3  ;;  %v48_v11 = vcvt.s32.f32 %v186_v4  ;;  %v49_v12 = vcvt.s32.f32 %v189_v5  ;;  %v50_v13 = vcvt.s32.f32 %v190_v6  ;;  %v134_v24 = vld [vmem:[%s265_s3] sm:$0xff]  ;;  %v137_v31 = vld [vmem:[%s265_s3 + $0x18] sm:$0xff] }
   0x6   :  { %v51_v14 = vpack.c.bf16 %v48_v11, %v47_v10  ;;  %v52_v15 = vpack.c.bf16 %v50_v13, %v49_v12  ;;  %79 = vmatpush.bf16.msra.mxu0 %v170_v9  ;;  %192 = vmatpush.bf16.msra.mxu1 %v170_v9 }
   0x9   :  { %168 = vmatmul.msk.bf16.vlgmr.msra.gmra.mxu0 %vm65_vm0, %v51_v14  ;;  %169 = vmatmul.msk.bf16.vlgmr.msra.gmra.mxu1 %vm65_vm0, %v52_v15 }
   0xb   :  { %127 = vperm.xlu1 %196, %v109_v16   ;;  %117 = vperm.xlu0 %195, %v107_v17  }
  0x75   :  { %v123_v18 = vpop.permute.xlu1 %122  ;;  %v113_v19 = vpop.permute.xlu0 %112 }
  0x7d   :  { %v128_v26 = vpop.permute.xlu1 %127  ;;  %v118_v27 = vpop.permute.xlu0 %117 }
  0x86   :  { %v81_v20 = vpop.f32.mrf.mxu0  ;;  %v86_v21 = vpop.f32.mrf.mxu1 }
  0x87   :  { %v130_v22 = vmul.f32 %v113_v19, %v81_v20  ;;  %v132_v23 = vmul.f32 %v123_v18, %v86_v21 }
  0x89   :  { %v138_v32 = vadd.f32 %v134_v24, %v130_v22  ;;  %v140_v33 = vadd.f32 %v136_v25, %v132_v23 }
  0x8b   :  { %v142_v38 = vmax.f32 %v138_v32, 0.0  ;;  %v144_v39 = vmax.f32 %v140_v33, 0.0 }
  0x8e   :  { %v83_v28 = vpop.f32.mrf.mxu0  ;;  %v88_v30 = vpop.f32.mrf.mxu1 }
  0x8f   :  { %v131_v34 = vmul.f32 %v118_v27, %v83_v28  ;;  %v133_v35 = vmul.f32 %v128_v26, %v88_v30 }
  0x91   :  { %v139_v36 = vadd.f32 %v135_v29, %v131_v34  ;;  %v141_v37 = vadd.f32 %v137_v31, %v133_v35 }
  0x93   :  { %v143_v40 = vmax.f32 %v139_v36, 0.0  ;;  %v145_v41 = vmax.f32 %v141_v37, 0.0 }
  0x95   :  { %v175_v42 = vpack.c.bf16 %v143_v40, %v142_v38  ;;  %v180_v43 = vpack.c.bf16 %v145_v41, %v144_v39 }
  0x97   :  { %176 = vst [vmem:[%s266_s4] sm:$0xff] %v175_v42  }
  0x98   :  { %182 = vst [vmem:[%s266_s4 + $0x8] sm:$0xff] %v180_v43  }

// kernel: graphsage_net_forward.3
= control target key start
LH: loop header
LB: loop body
LE: loop exit
PB: predicated region body
PF: predicated region fallthrough
CT: control target
= control target key end

     0   :  { %v178_v2 = vmov 0   ;;  %vm65_vm0 = vcmask 261120   ;;  %s249_s1 = inlined_call_operand.vmem [shape: bf16[32,128], index: 1, kind: input, shape index: {}]   ;;  %s250_s0 = inlined_call_operand.vmem [shape: s8[32,32], index: 0, kind: input, shape index: {}]   ;;  %s251_s2 = inlined_call_operand.vmem [shape: f32[32,1], index: 2, kind: input, shape index: {}]   ;;  %s252_s3 = inlined_call_operand.vmem [shape: f32[32,128], index: 3, kind: input, shape index: {}]   ;;  %s253_s4 = inlined_call_operand.vmem [shape: f32[32,128], index: 4, kind: output, shape index: {}]  }
   0x1   :  { %v163_v0 = vld [vmem:[%s249_s1 + $0x8] sm:$0xff]  ;;  %v165_v1 = vld [vmem:[%s250_s0] sm:$0xff]   ;;  %177 = vset.pattern.permute.xlu1 %v178_v2  ;;  %176 = vset.pattern.permute.xlu0 %v178_v2  ;;  %v108_v7 = vld [vmem:[%s251_s2 + $0x10] sm:$0xff] }
   0x2   :  { %v166_v3 = vunpack.c.0.s8 %v165_v1  ;;  %v167_v4 = vunpack.c.1.s8 %v165_v1  ;;  %v170_v5 = vunpack.c.2.s8 %v165_v1  ;;  %v171_v6 = vunpack.c.3.s8 %v165_v1  ;;  %v106_v8 = vld [vmem:[%s251_s2] sm:$0xff]  ;;  %78 = vmatpush.bf16.msra.mxu0 %v163_v0  ;;  %172 = vmatpush.bf16.msra.mxu1 %v163_v0  ;;  %v109_v16 = vld [vmem:[%s251_s2 + $0x18] sm:$0xff]  ;;  %v107_v17 = vld [vmem:[%s251_s2 + $0x8] sm:$0xff] }
   0x3   :  { %v162_v9 = vld [vmem:[%s249_s1] sm:$0xff]  ;;  %122 = vperm.xlu1 %177, %v108_v7   ;;  %112 = vperm.xlu0 %176, %v106_v8   ;;  %v136_v23 = vld [vmem:[%s252_s3 + $0x10] sm:$0xff]  ;;  %v135_v31 = vld [vmem:[%s252_s3 + $0x8] sm:$0xff] }
   0x4   :  { %v47_v10 = vcvt.s32.f32 %v166_v3  ;;  %v48_v11 = vcvt.s32.f32 %v167_v4  ;;  %v49_v12 = vcvt.s32.f32 %v170_v5  ;;  %v50_v13 = vcvt.s32.f32 %v171_v6  ;;  %v134_v21 = vld [vmem:[%s252_s3] sm:$0xff]  ;;  %v137_v33 = vld [vmem:[%s252_s3 + $0x18] sm:$0xff] }
   0x6   :  { %v51_v14 = vpack.c.bf16 %v48_v11, %v47_v10  ;;  %v52_v15 = vpack.c.bf16 %v50_v13, %v49_v12  ;;  %79 = vmatpush.bf16.msra.mxu0 %v162_v9  ;;  %173 = vmatpush.bf16.msra.mxu1 %v162_v9 }
   0x9   :  { %160 = vmatmul.msk.bf16.vlgmr.msra.gmra.mxu0 %vm65_vm0, %v51_v14  ;;  %161 = vmatmul.msk.bf16.vlgmr.msra.gmra.mxu1 %vm65_vm0, %v52_v15 }
   0xb   :  { %127 = vperm.xlu1 %177, %v109_v16   ;;  %117 = vperm.xlu0 %176, %v107_v17  }
  0x75   :  { %v123_v18 = vpop.permute.xlu1 %122  ;;  %v113_v19 = vpop.permute.xlu0 %112 }
  0x7d   :  { %v128_v28 = vpop.permute.xlu1 %127  ;;  %v118_v29 = vpop.permute.xlu0 %117 }
  0x86   :  { %v81_v20 = vpop.f32.mrf.mxu0  ;;  %v86_v22 = vpop.f32.mrf.mxu1 }
  0x87   :  { %v130_v24 = vmul.f32 %v113_v19, %v81_v20  ;;  %v132_v25 = vmul.f32 %v123_v18, %v86_v22 }
  0x89   :  { %v138_v26 = vadd.f32 %v134_v21, %v130_v24  ;;  %v140_v27 = vadd.f32 %v136_v23, %v132_v25 }
  0x8b   :  { %142 = vst [vmem:[%s253_s4] sm:$0xff] %v138_v26 }
  0x8c   :  { %144 = vst [vmem:[%s253_s4 + $0x10] sm:$0xff] %v140_v27 }
  0x8e   :  { %v83_v30 = vpop.f32.mrf.mxu0  ;;  %v88_v32 = vpop.f32.mrf.mxu1 }
  0x8f   :  { %v131_v34 = vmul.f32 %v118_v29, %v83_v30  ;;  %v133_v35 = vmul.f32 %v128_v28, %v88_v32 }
  0x91   :  { %v139_v36 = vadd.f32 %v135_v31, %v131_v34  ;;  %v141_v37 = vadd.f32 %v137_v33, %v133_v35 }
  0x93   :  { %143 = vst [vmem:[%s253_s4 + $0x8] sm:$0xff] %v139_v36 }
  0x94   :  { %145 = vst [vmem:[%s253_s4 + $0x18] sm:$0xff] %v141_v37 }

</bundles_post_ra>
